<compile_context>
chip_gen: v7x
topology: tpu7x:2x2x1
jax: 0.10.0
libtpu: 0.0.40
codegen_flags: <defaults>
</compile_context>

<pallas_src>
import functools

import jax
import jax.numpy as jnp
from jax.experimental import pallas as pl
from jax.experimental.pallas import tpu as pltpu


LANE = 128          # lane granule: pad every feature dim to a multiple of this
BATCH_TILE = 128    # MXU M-tile; saturates rows on v5e, dense on v6e/v7x


def _round_up(x, m):
    return (x + m - 1) // m * m


def _dqn_mlp_kernel(x_ref,
                    w1_ref, b1_ref,
                    w2_ref, b2_ref,
                    w3_ref, b3_ref,
                    w4_ref, b4_ref,
                    w5_ref, b5_ref,
                    o_ref):
    """One 128-row batch tile: 4x (Linear+ReLU) + Linear, all on MXU/VPU.

    Weights are bf16 and VMEM-resident across grid steps; activations are cast
    to bf16 only for the dot operands, accumulation / bias / ReLU are f32.
    """
    def layer(h, w_ref, b_ref, relu):
        y = jnp.dot(h.astype(jnp.bfloat16), w_ref[...],
                    preferred_element_type=jnp.float32) + b_ref[...]
        return jnp.maximum(y, 0.0) if relu else y

    h = x_ref[...]
    h = layer(h, w1_ref, b1_ref, True)
    h = layer(h, w2_ref, b2_ref, True)
    h = layer(h, w3_ref, b3_ref, True)
    h = layer(h, w4_ref, b4_ref, True)
    o_ref[...] = layer(h, w5_ref, b5_ref, False)


@functools.partial(jax.jit, static_argnames=("n_actions",))
def linear_deep_q_network_forward(state, padded_params, n_actions):
    """state: (B, input_dim) f32. padded_params: flat (w1,b1,...,w5,b5) from
    prepare_params (weights bf16 lane-padded (in_pad,out_pad), biases f32
    (1,out_pad)). Returns (B, n_actions) f32."""
    B, d_in = state.shape
    d_in_pad = padded_params[0].shape[0]
    out_pad = padded_params[-1].shape[-1]
    Bp = _round_up(max(B, 1), BATCH_TILE)

    # Zero-pad batch rows + input lanes (exact: zeros are inert everywhere).
    x = jnp.zeros((Bp, d_in_pad), jnp.float32).at[:B, :d_in].set(state)

    grid = (Bp // BATCH_TILE,)
    x_spec = pl.BlockSpec((BATCH_TILE, d_in_pad), lambda i: (i, 0))
    # Constant index_map -> params DMA'd once, resident in VMEM for all tiles.
    param_specs = [pl.BlockSpec(p.shape, lambda i: (0, 0)) for p in padded_params]
    out_spec = pl.BlockSpec((BATCH_TILE, out_pad), lambda i: (i, 0))

    flops = 2 * Bp * sum(w.shape[0] * w.shape[1] for w in padded_params[0::2])
    bytes_accessed = (x.size * 4 + Bp * out_pad * 4
                      + sum(p.size * p.dtype.itemsize for p in padded_params))

    out = pl.pallas_call(
        _dqn_mlp_kernel,
        out_shape=jax.ShapeDtypeStruct((Bp, out_pad), jnp.float32),
        grid_spec=pltpu.PrefetchScalarGridSpec(
            num_scalar_prefetch=0,
            grid=grid,
            in_specs=[x_spec] + param_specs,
            out_specs=out_spec,
        ),
        compiler_params=pltpu.CompilerParams(
            dimension_semantics=("parallel",)),   # v7x: shard tiles over both TCs
        cost_estimate=pl.CostEstimate(
            flops=flops, transcendentals=0, bytes_accessed=bytes_accessed),
    )(x, *padded_params)
    return out[:B, :n_actions]


def init_linear(key, fan_in, fan_out):
    """PyTorch nn.Linear default init: U(-1/sqrt(fan_in), 1/sqrt(fan_in))."""
    kw, kb = jax.random.split(key)
    bound = 1.0 / jnp.sqrt(float(fan_in))
    w = jax.random.uniform(kw, (fan_in, fan_out), jnp.float32, -bound, bound)
    b = jax.random.uniform(kb, (1, fan_out), jnp.float32, -bound, bound)
    return w, b


def prepare_params(raw_params):
    """Lane-pad weights/biases to multiples of 128 and cast weights to bf16.

    Exact w.r.t. the unpadded network: padded weight rows/cols and bias lanes
    are zero, every hidden layer is followed by ReLU (so padded activations
    stay 0), and padded output columns are sliced off by the wrapper.
    """
    padded = []
    for w, b in zip(raw_params[0::2], raw_params[1::2]):
        fi, fo = w.shape
        fi_p, fo_p = _round_up(fi, LANE), _round_up(fo, LANE)
        wp = jnp.zeros((fi_p, fo_p), jnp.float32).at[:fi, :fo].set(w)
        bp = jnp.zeros((1, fo_p), jnp.float32).at[:, :fo].set(b)
        padded.extend([wp.astype(jnp.bfloat16), bp])
    return tuple(padded)


if __name__ == "__main__":
    # Module spec: input_dims=(16,), n_actions=(4,), hidden = 256->128->64->32.
    input_dim = 16
    n_actions = 4
    batch = 8

    key = jax.random.PRNGKey(0)
    k_x, k_big, k1, k2, k3, k4, k5 = jax.random.split(key, 7)

    dims = [input_dim, 256, 128, 64, 32, n_actions]
    raw_params = []
    for i, lk in enumerate([k1, k2, k3, k4, k5]):
        w, b = init_linear(lk, dims[i], dims[i + 1])
        raw_params.extend([w, b])
    raw_params = tuple(raw_params)
    params = prepare_params(raw_params)

    def ref_forward(x, cast_bf16):
        h = x
        for i in range(5):
            w, b = raw_params[2 * i], raw_params[2 * i + 1]
            if cast_bf16:
                y = jnp.dot(h.astype(jnp.bfloat16), w.astype(jnp.bfloat16),
                            preferred_element_type=jnp.float32) + b
            else:
                y = h @ w + b
            h = jnp.maximum(y, 0.0) if i < 4 else y
        return h

    # Small (module-sized) batch: correctness at the shape the module implies.
    state = jax.random.normal(k_x, (batch, input_dim), jnp.float32)
    actions = jax.block_until_ready(
        linear_deep_q_network_forward(state, params, n_actions))
    assert actions.shape == (batch, n_actions)
    # Tight check vs. a JAX reference using the same bf16 matmul operands.
    assert jnp.allclose(actions, ref_forward(state, True), atol=1e-4, rtol=1e-4)
    # Loose check vs. the pure-fp32 PyTorch-equivalent forward.
    assert jnp.allclose(actions, ref_forward(state, False), atol=5e-2, rtol=5e-2)

    # Replay-buffer-sized batch: exercises the multi-tile parallel grid with
    # weights resident in VMEM across tiles.
    big_state = jax.random.normal(k_big, (256, input_dim), jnp.float32)
    big_actions = jax.block_until_ready(
        linear_deep_q_network_forward(big_state, params, n_actions))
    assert big_actions.shape == (256, n_actions)
    assert jnp.allclose(big_actions, ref_forward(big_state, True),
                        atol=1e-4, rtol=1e-4)

    print("KERNEL_OK")
</pallas_src>

<mosaic_0001>
module attributes {stable_mosaic.version = 11 : i64} {
  func.func @_dqn_mlp_kernel(%arg0: i32, %arg1: memref<128x128xf32, #tpu.memory_space<vmem>>, %arg2: memref<128x256xbf16, #tpu.memory_space<vmem>>, %arg3: memref<1x256xf32, #tpu.memory_space<vmem>>, %arg4: memref<256x128xbf16, #tpu.memory_space<vmem>>, %arg5: memref<1x128xf32, #tpu.memory_space<vmem>>, %arg6: memref<128x128xbf16, #tpu.memory_space<vmem>>, %arg7: memref<1x128xf32, #tpu.memory_space<vmem>>, %arg8: memref<128x128xbf16, #tpu.memory_space<vmem>>, %arg9: memref<1x128xf32, #tpu.memory_space<vmem>>, %arg10: memref<128x128xbf16, #tpu.memory_space<vmem>>, %arg11: memref<1x128xf32, #tpu.memory_space<vmem>>, %arg12: memref<128x128xf32, #tpu.memory_space<vmem>>) attributes {dimension_semantics = [#tpu.dimension_semantics<parallel>], iteration_bounds = array<i64: 1>, scalar_prefetch = 0 : i64, scratch_operands = 0 : i64, tpu.core_type = #tpu.core_type<tc>, window_params = [{transform_indices = @transform_0, window_bounds = array<i64: 128, 128>}, {pipeline_mode = #tpu.pipeline_mode<synchronous>, transform_indices = @transform_1, window_bounds = array<i64: 128, 256>}, {pipeline_mode = #tpu.pipeline_mode<synchronous>, transform_indices = @transform_2, window_bounds = array<i64: 1, 256>}, {pipeline_mode = #tpu.pipeline_mode<synchronous>, transform_indices = @transform_3, window_bounds = array<i64: 256, 128>}, {pipeline_mode = #tpu.pipeline_mode<synchronous>, transform_indices = @transform_4, window_bounds = array<i64: 1, 128>}, {pipeline_mode = #tpu.pipeline_mode<synchronous>, transform_indices = @transform_5, window_bounds = array<i64: 128, 128>}, {pipeline_mode = #tpu.pipeline_mode<synchronous>, transform_indices = @transform_6, window_bounds = array<i64: 1, 128>}, {pipeline_mode = #tpu.pipeline_mode<synchronous>, transform_indices = @transform_7, window_bounds = array<i64: 128, 128>}, {pipeline_mode = #tpu.pipeline_mode<synchronous>, transform_indices = @transform_8, window_bounds = array<i64: 1, 128>}, {pipeline_mode = #tpu.pipeline_mode<synchronous>, transform_indices = @transform_9, window_bounds = array<i64: 128, 128>}, {pipeline_mode = #tpu.pipeline_mode<synchronous>, transform_indices = @transform_10, window_bounds = array<i64: 1, 128>}, {transform_indices = @transform_11, window_bounds = array<i64: 128, 128>}]} {
    %c0 = arith.constant 0 : index
    %c0_0 = arith.constant 0 : index
    %0 = vector.load %arg1[%c0, %c0_0] : memref<128x128xf32, #tpu.memory_space<vmem>>, vector<128x128xf32>
    %1 = arith.truncf %0 : vector<128x128xf32> to vector<128x128xbf16>
    %c0_1 = arith.constant 0 : index
    %c0_2 = arith.constant 0 : index
    %2 = vector.load %arg2[%c0_1, %c0_2] : memref<128x256xbf16, #tpu.memory_space<vmem>>, vector<128x256xbf16>
    %cst = arith.constant dense<0.000000e+00> : vector<128x256xf32>
    %3 = tpu.matmul %1, %2, %cst {dimension_numbers = #tpu.dot_dimension_numbers<[1], [0], [0], [1], [0, 0, 1, 1], [], []>} : vector<128x128xbf16>, vector<128x256xbf16>, vector<128x256xf32> -> vector<128x256xf32>
    %c0_3 = arith.constant 0 : index
    %c0_4 = arith.constant 0 : index
    %4 = vector.load %arg3[%c0_3, %c0_4] : memref<1x256xf32, #tpu.memory_space<vmem>>, vector<1x256xf32>
    %5 = vector.broadcast %4 : vector<1x256xf32> to vector<128x256xf32>
    %6 = arith.addf %3, %5 : vector<128x256xf32>
    %cst_5 = arith.constant 0.000000e+00 : f32
    %7 = vector.broadcast %cst_5 : f32 to vector<128x256xf32>
    %8 = arith.maximumf %6, %7 : vector<128x256xf32>
    %9 = arith.truncf %8 : vector<128x256xf32> to vector<128x256xbf16>
    %c0_6 = arith.constant 0 : index
    %c0_7 = arith.constant 0 : index
    %10 = vector.load %arg4[%c0_6, %c0_7] : memref<256x128xbf16, #tpu.memory_space<vmem>>, vector<256x128xbf16>
    %cst_8 = arith.constant dense<0.000000e+00> : vector<128x128xf32>
    %11 = tpu.matmul %9, %10, %cst_8 {dimension_numbers = #tpu.dot_dimension_numbers<[1], [0], [0], [1], [0, 0, 1, 1], [], []>} : vector<128x256xbf16>, vector<256x128xbf16>, vector<128x128xf32> -> vector<128x128xf32>
    %c0_9 = arith.constant 0 : index
    %c0_10 = arith.constant 0 : index
    %12 = vector.load %arg5[%c0_9, %c0_10] : memref<1x128xf32, #tpu.memory_space<vmem>>, vector<1x128xf32>
    %13 = vector.broadcast %12 : vector<1x128xf32> to vector<128x128xf32>
    %14 = arith.addf %11, %13 : vector<128x128xf32>
    %cst_11 = arith.constant 0.000000e+00 : f32
    %15 = vector.broadcast %cst_11 : f32 to vector<128x128xf32>
    %16 = arith.maximumf %14, %15 : vector<128x128xf32>
    %17 = arith.truncf %16 : vector<128x128xf32> to vector<128x128xbf16>
    %c0_12 = arith.constant 0 : index
    %c0_13 = arith.constant 0 : index
    %18 = vector.load %arg6[%c0_12, %c0_13] : memref<128x128xbf16, #tpu.memory_space<vmem>>, vector<128x128xbf16>
    %cst_14 = arith.constant dense<0.000000e+00> : vector<128x128xf32>
    %19 = tpu.matmul %17, %18, %cst_14 {dimension_numbers = #tpu.dot_dimension_numbers<[1], [0], [0], [1], [0, 0, 1, 1], [], []>} : vector<128x128xbf16>, vector<128x128xbf16>, vector<128x128xf32> -> vector<128x128xf32>
    %c0_15 = arith.constant 0 : index
    %c0_16 = arith.constant 0 : index
    %20 = vector.load %arg7[%c0_15, %c0_16] : memref<1x128xf32, #tpu.memory_space<vmem>>, vector<1x128xf32>
    %21 = vector.broadcast %20 : vector<1x128xf32> to vector<128x128xf32>
    %22 = arith.addf %19, %21 : vector<128x128xf32>
    %cst_17 = arith.constant 0.000000e+00 : f32
    %23 = vector.broadcast %cst_17 : f32 to vector<128x128xf32>
    %24 = arith.maximumf %22, %23 : vector<128x128xf32>
    %25 = arith.truncf %24 : vector<128x128xf32> to vector<128x128xbf16>
    %c0_18 = arith.constant 0 : index
    %c0_19 = arith.constant 0 : index
    %26 = vector.load %arg8[%c0_18, %c0_19] : memref<128x128xbf16, #tpu.memory_space<vmem>>, vector<128x128xbf16>
    %cst_20 = arith.constant dense<0.000000e+00> : vector<128x128xf32>
    %27 = tpu.matmul %25, %26, %cst_20 {dimension_numbers = #tpu.dot_dimension_numbers<[1], [0], [0], [1], [0, 0, 1, 1], [], []>} : vector<128x128xbf16>, vector<128x128xbf16>, vector<128x128xf32> -> vector<128x128xf32>
    %c0_21 = arith.constant 0 : index
    %c0_22 = arith.constant 0 : index
    %28 = vector.load %arg9[%c0_21, %c0_22] : memref<1x128xf32, #tpu.memory_space<vmem>>, vector<1x128xf32>
    %29 = vector.broadcast %28 : vector<1x128xf32> to vector<128x128xf32>
    %30 = arith.addf %27, %29 : vector<128x128xf32>
    %cst_23 = arith.constant 0.000000e+00 : f32
    %31 = vector.broadcast %cst_23 : f32 to vector<128x128xf32>
    %32 = arith.maximumf %30, %31 : vector<128x128xf32>
    %33 = arith.truncf %32 : vector<128x128xf32> to vector<128x128xbf16>
    %c0_24 = arith.constant 0 : index
    %c0_25 = arith.constant 0 : index
    %34 = vector.load %arg10[%c0_24, %c0_25] : memref<128x128xbf16, #tpu.memory_space<vmem>>, vector<128x128xbf16>
    %cst_26 = arith.constant dense<0.000000e+00> : vector<128x128xf32>
    %35 = tpu.matmul %33, %34, %cst_26 {dimension_numbers = #tpu.dot_dimension_numbers<[1], [0], [0], [1], [0, 0, 1, 1], [], []>} : vector<128x128xbf16>, vector<128x128xbf16>, vector<128x128xf32> -> vector<128x128xf32>
    %c0_27 = arith.constant 0 : index
    %c0_28 = arith.constant 0 : index
    %36 = vector.load %arg11[%c0_27, %c0_28] : memref<1x128xf32, #tpu.memory_space<vmem>>, vector<1x128xf32>
    %37 = vector.broadcast %36 : vector<1x128xf32> to vector<128x128xf32>
    %38 = arith.addf %35, %37 : vector<128x128xf32>
    %c0_29 = arith.constant 0 : index
    %c0_30 = arith.constant 0 : index
    %39 = vector.load %arg12[%c0_29, %c0_30] : memref<128x128xf32, #tpu.memory_space<vmem>>, vector<128x128xf32>
    tpu.vector_store %arg12[%c0_29, %c0_30], %38 {strides = array<i32>} : memref<128x128xf32, #tpu.memory_space<vmem>>, vector<128x128xf32>,
    return
  }
  func.func @transform_0(%arg0: i32) -> (i32, i32) {
    %c0_i32 = arith.constant 0 : i32
    %c0_i32_0 = arith.constant 0 : i32
    return %arg0, %c0_i32 : i32, i32
  }
  func.func @transform_1(%arg0: i32) -> (i32, i32) {
    %c0_i32 = arith.constant 0 : i32
    %c0_i32_0 = arith.constant 0 : i32
    %c0_i32_1 = arith.constant 0 : i32
    return %c0_i32, %c0_i32_0 : i32, i32
  }
  func.func @transform_2(%arg0: i32) -> (i32, i32) {
    %c0_i32 = arith.constant 0 : i32
    %c0_i32_0 = arith.constant 0 : i32
    %c0_i32_1 = arith.constant 0 : i32
    return %c0_i32, %c0_i32_0 : i32, i32
  }
  func.func @transform_3(%arg0: i32) -> (i32, i32) {
    %c0_i32 = arith.constant 0 : i32
    %c0_i32_0 = arith.constant 0 : i32
    %c0_i32_1 = arith.constant 0 : i32
    return %c0_i32, %c0_i32_0 : i32, i32
  }
  func.func @transform_4(%arg0: i32) -> (i32, i32) {
    %c0_i32 = arith.constant 0 : i32
    %c0_i32_0 = arith.constant 0 : i32
    %c0_i32_1 = arith.constant 0 : i32
    return %c0_i32, %c0_i32_0 : i32, i32
  }
  func.func @transform_5(%arg0: i32) -> (i32, i32) {
    %c0_i32 = arith.constant 0 : i32
    %c0_i32_0 = arith.constant 0 : i32
    %c0_i32_1 = arith.constant 0 : i32
    return %c0_i32, %c0_i32_0 : i32, i32
  }
  func.func @transform_6(%arg0: i32) -> (i32, i32) {
    %c0_i32 = arith.constant 0 : i32
    %c0_i32_0 = arith.constant 0 : i32
    %c0_i32_1 = arith.constant 0 : i32
    return %c0_i32, %c0_i32_0 : i32, i32
  }
  func.func @transform_7(%arg0: i32) -> (i32, i32) {
    %c0_i32 = arith.constant 0 : i32
    %c0_i32_0 = arith.constant 0 : i32
    %c0_i32_1 = arith.constant 0 : i32
    return %c0_i32, %c0_i32_0 : i32, i32
  }
  func.func @transform_8(%arg0: i32) -> (i32, i32) {
    %c0_i32 = arith.constant 0 : i32
    %c0_i32_0 = arith.constant 0 : i32
    %c0_i32_1 = arith.constant 0 : i32
    return %c0_i32, %c0_i32_0 : i32, i32
  }
  func.func @transform_9(%arg0: i32) -> (i32, i32) {
    %c0_i32 = arith.constant 0 : i32
    %c0_i32_0 = arith.constant 0 : i32
    %c0_i32_1 = arith.constant 0 : i32
    return %c0_i32, %c0_i32_0 : i32, i32
  }
  func.func @transform_10(%arg0: i32) -> (i32, i32) {
    %c0_i32 = arith.constant 0 : i32
    %c0_i32_0 = arith.constant 0 : i32
    %c0_i32_1 = arith.constant 0 : i32
    return %c0_i32, %c0_i32_0 : i32, i32
  }
  func.func @transform_11(%arg0: i32) -> (i32, i32) {
    %c0_i32 = arith.constant 0 : i32
    %c0_i32_0 = arith.constant 0 : i32
    return %arg0, %c0_i32 : i32, i32
  }
}

</mosaic_0001>

<bundles_post_ra>
// kernel: linear_deep_q_network_forward.1
= control target key start
LH: loop header
LB: loop body
LE: loop exit
PB: predicated region body
PF: predicated region fallthrough
CT: control target
= control target key end

     0   :  { %16 = vsyncpa [#allocation3], 0  ;;  %s2047_s0 = inlined_call_operand.vmem [shape: f32[128,128], index: 0, kind: input, shape index: {}]   ;;  %s2048_s1 = inlined_call_operand.vmem [shape: bf16[128,256], index: 1, kind: input, shape index: {}]   ;;  %s2049_s2 = inlined_call_operand.vmem [shape: f32[1,256], index: 2, kind: input, shape index: {}]   ;;  %s2050_s3 = inlined_call_operand.hbm [shape: bf16[256,128], index: 3, kind: input, shape index: {}]   ;;  %s2051_s4 = inlined_call_operand.vmem [shape: f32[1,128], index: 4, kind: input, shape index: {}]   ;;  %s2052_s5 = inlined_call_operand.hbm [shape: bf16[128,128], index: 5, kind: input, shape index: {}]   ;;  %s2053_s6 = inlined_call_operand.vmem [shape: f32[1,128], index: 6, kind: input, shape index: {}]   ;;  %s2054_s7 = inlined_call_operand.hbm [shape: bf16[128,128], index: 7, kind: input, shape index: {}]   ;;  %s2055_s8 = inlined_call_operand.vmem [shape: f32[1,128], index: 8, kind: input, shape index: {}]   ;;  %s2056_s9 = inlined_call_operand.hbm [shape: bf16[128,128], index: 9, kind: input, shape index: {}]   ;;  %s2057_s10 = inlined_call_operand.vmem [shape: f32[1,128], index: 10, kind: input, shape index: {}]   ;;  %s2058_s11 = inlined_call_operand.vmem [shape: f32[128,128], index: 11, kind: output, shape index: {}]  }
   0x1   :  { %17 = vsyncpa [#allocation5], 0 }
   0x2   :  { %18 = vsyncpa [#allocation8], 0  ;;  %s1667_s17 = smov [#allocation4]   ;;  %s1668_s19 = smov [#allocation2]  }
   0x3   :  { %s44_s18 = sshll.u32 %s1667_s17, 4  ;;  %s30_s20 = sshll.u32 %s1668_s19, 4  ;;  %s45_s18 = int_to_ptr.vmem [resolvable:$true] %s44_s18  ;;  %s1734_s20 = int_to_ptr.vmem [resolvable:$true] %s30_s20 }
   0x4   :  { %s1573_s23 = scalar_lea.hbm %s2052_s5, 1024 }
   0x5   :  { %p1574_p0 = scmp.ne.s32.totalorder %s2052_s5, %s1573_s23  ;;  %p1577_p1 = scmp.lt.u32.totalorder %s1573_s23, %s2052_s5 }
   0x7   :  { %p1579_p2 = pnand %p1577_p1, %p1574_p0 }
   0x9   :  { %1582 = shalt.err (!%p1579_p2)
}
   0xa   :  { %s1583_s28 = scalar_lea.vmem %s45_s18, 1024  ;;  %p1588_p4 = scmp.lt.s32.totalorder %s45_s18, %s45_s18 }
   0xb   :  { %p1584_p3 = scmp.ne.s32.totalorder %s45_s18, %s1583_s28  ;;  %p1589_p5 = scmp.lt.s32.totalorder %s1583_s28, %s1583_s28 }
   0xd   :  { %p1590_p6 = por %p1589_p5, %p1588_p4 }
   0xf   :  { %p1591_p7 = pnand %p1590_p6, %p1584_p3 }
  0x11   :  { %1594 = shalt.err (!%p1591_p7)
}
  0x12   :  { %s1669_s29 = smov 64   ;;  %s1670_s30 = smov 4  }
  0x13   :  { %50 = dma.hbm_to_vmem [thread:$0]  %s2052_s5, 1024, %s45_s18, [#allocation5], %s1669_s29, %s1669_s29, %s1670_s30  }
  0x14   :  { %s1595_s16 = scalar_lea.hbm %s2050_s3, 2048 }
  0x15   :  { %p1596_p8 = scmp.ne.s32.totalorder %s2050_s3, %s1595_s16  ;;  %p1599_p9 = scmp.lt.u32.totalorder %s1595_s16, %s2050_s3 }
  0x17   :  { %p1601_p10 = pnand %p1599_p9, %p1596_p8 }
  0x19   :  { %1604 = shalt.err (!%p1601_p10)
}
  0x1a   :  { %s1605_s23 = scalar_lea.vmem %s1734_s20, 2048  ;;  %p1610_p12 = scmp.lt.s32.totalorder %s1734_s20, %s1734_s20 }
  0x1b   :  { %p1606_p11 = scmp.ne.s32.totalorder %s1734_s20, %s1605_s23  ;;  %p1611_p13 = scmp.lt.s32.totalorder %s1605_s23, %s1605_s23 }
  0x1d   :  { %p1612_p0 = por %p1611_p13, %p1610_p12 }
  0x1f   :  { %p1613_p1 = pnand %p1612_p0, %p1606_p11 }
  0x21   :  { %1616 = shalt.err (!%p1613_p1)
}
  0x22   :  { %36 = dma.hbm_to_vmem [thread:$0]  %s2050_s3, 2048, %s1734_s20, [#allocation3], %s1669_s29, %s1669_s29, %s1670_s30  }
  0x23   :  { %s1671_s24 = smov [#allocation6]   ;;  %s1672_s26 = smov [#allocation7]  }
  0x24   :  { %s58_s25 = sshll.u32 %s1671_s24, 4  ;;  %s72_s27 = sshll.u32 %s1672_s26, 4  ;;  %s59_s25 = int_to_ptr.vmem [resolvable:$true] %s58_s25  ;;  %s1771_s27 = int_to_ptr.vmem [resolvable:$true] %s72_s27 }
  0x25   :  { %s1617_s13 = scalar_lea.hbm %s2054_s7, 1024 }
  0x26   :  { %p1618_p2 = scmp.ne.s32.totalorder %s2054_s7, %s1617_s13  ;;  %p1621_p3 = scmp.lt.u32.totalorder %s1617_s13, %s2054_s7 }
  0x28   :  { %p1623_p4 = pnand %p1621_p3, %p1618_p2 }
  0x2a   :  { %1626 = shalt.err (!%p1623_p4)
}
  0x2b   :  { %s1627_s3 = scalar_lea.vmem %s59_s25, 1024  ;;  %p1632_p6 = scmp.lt.s32.totalorder %s59_s25, %s59_s25 }
  0x2c   :  { %p1628_p5 = scmp.ne.s32.totalorder %s59_s25, %s1627_s3  ;;  %p1633_p7 = scmp.lt.s32.totalorder %s1627_s3, %s1627_s3 }
  0x2e   :  { %p1634_p8 = por %p1633_p7, %p1632_p6 }
  0x30   :  { %p1635_p9 = pnand %p1634_p8, %p1628_p5 }
  0x32   :  { %1638 = shalt.err (!%p1635_p9)
}
  0x33   :  { %64 = dma.hbm_to_vmem [thread:$0]  %s2054_s7, 1024, %s59_s25, [#allocation5], %s1669_s29, %s1669_s29, %s1670_s30  }
  0x34   :  { %s1639_s23 = scalar_lea.hbm %s2056_s9, 1024 }
  0x35   :  { %p1640_p10 = scmp.ne.s32.totalorder %s2056_s9, %s1639_s23  ;;  %p1643_p11 = scmp.lt.u32.totalorder %s1639_s23, %s2056_s9 }
  0x37   :  { %p1645_p12 = pnand %p1643_p11, %p1640_p10 }
  0x39   :  { %1648 = shalt.err (!%p1645_p12)
}
  0x3a   :  { %s1649_s28 = scalar_lea.vmem %s1771_s27, 1024  ;;  %p1654_p0 = scmp.lt.s32.totalorder %s1771_s27, %s1771_s27 }
  0x3b   :  { %p1650_p13 = scmp.ne.s32.totalorder %s1771_s27, %s1649_s28  ;;  %p1655_p1 = scmp.lt.s32.totalorder %s1649_s28, %s1649_s28 }
  0x3d   :  { %p1656_p2 = por %p1655_p1, %p1654_p0 }
  0x3f   :  { %p1657_p3 = pnand %p1656_p2, %p1650_p13 }
  0x41   :  { %1660 = shalt.err (!%p1657_p3)
}
  0x42   :  { %78 = dma.hbm_to_vmem [thread:$0]  %s2056_s9, 1024, %s1771_s27, [#allocation8], %s1669_s29, %s1669_s29, %s1670_s30  }
  0x43   :  { %1661 = dma.done.wait [#allocation3], 2048  }
  0x44   :  { %1662 = vsyncadd [#allocation3], 4294965248 }
  0x45   :  { %1663 = dma.done.wait [#allocation5], 2048  }
  0x46   :  { %1664 = vsyncadd [#allocation5], 4294965248 }
  0x47   :  { %1665 = dma.done.wait [#allocation8], 1024  }
  0x48   :  { %1666 = vsyncadd [#allocation8], 4294966272  ;;  %v1673_v0 = vmov 0   ;;  %v1509_v1 = vld [vmem:[%s2048_s1 + $0x4] ss:$8 sps:$4 sm:$0xff]   ;;  %v1537_v18 = vld [vmem:[#allocation2 + $0x50] sm:$0xff]   ;;  %v136_v60 = vlaneseq }
  0x49   :  { %258 = vmatprep.mubr.bf16.mxu0 %v1673_v0  ;;  %v1511_v2 = vld [vmem:[%s2048_s1] ss:$8 sps:$4 sm:$0xff]   ;;  %226 = vmatprep.subr.bf16.mxu0 %v1509_v1  ;;  %v1512_v3 = vld [vmem:[%s2048_s1 + $0x14] ss:$8 sps:$4 sm:$0xff]   ;;  %v1514_v4 = vld [vmem:[%s2048_s1 + $0x10] ss:$8 sps:$4 sm:$0xff]  }
  0x4a   :  { %227 = vmatpush1.bf16.msra.mxu0 %v1511_v2  ;;  %v1515_v5 = vld [vmem:[%s2048_s1 + $0x24] ss:$8 sps:$4 sm:$0xff]   ;;  %v1517_v6 = vld [vmem:[%s2048_s1 + $0x20] ss:$8 sps:$4 sm:$0xff]   ;;  %v1518_v7 = vld [vmem:[%s2048_s1 + $0x34] ss:$8 sps:$4 sm:$0xff]  }
  0x4b   :  { %228 = vmatprep.subr.bf16.mxu0 %v1512_v3  ;;  %v1520_v8 = vld [vmem:[%s2048_s1 + $0x30] ss:$8 sps:$4 sm:$0xff]   ;;  %v1521_v9 = vld [vmem:[%s2048_s1 + $0x44] ss:$8 sps:$4 sm:$0xff]   ;;  %v1523_v10 = vld [vmem:[%s2048_s1 + $0x40] ss:$8 sps:$4 sm:$0xff]  }
  0x4c   :  { %v1524_v11 = vld [vmem:[%s2048_s1 + $0x54] ss:$8 sps:$4 sm:$0xff]   ;;  %v1533_v12 = vld [vmem:[#allocation2 + $0x40] sm:$0xff]   ;;  %v1526_v13 = vld [vmem:[%s2048_s1 + $0x50] ss:$8 sps:$4 sm:$0xff]   ;;  %v137_v61 = vshrl.u32 %v136_v60, 7 }
  0x4d   :  { %v1534_v14 = vld [vmem:[#allocation2] sm:$0xff]   ;;  %1278 = vmatprep.subr.bf16.mxu1 %v1533_v12  ;;  %v1535_v16 = vld [vmem:[#allocation2 + $0x48] sm:$0xff]   ;;  %v1530_v20 = vld [vmem:[%s2048_s1 + $0x74] ss:$8 sps:$4 sm:$0xff]  }
  0x4e   :  { %229 = vmatpush1.bf16.msra.mxu0 %v1514_v4  ;;  %v1527_v15 = vld [vmem:[%s2048_s1 + $0x64] ss:$8 sps:$4 sm:$0xff]   ;;  %1279 = vmatpush3.bf16.msra.mxu1 %v1534_v14  ;;  %v1529_v19 = vld [vmem:[%s2048_s1 + $0x60] ss:$8 sps:$4 sm:$0xff]   ;;  %v1538_v21 = vld [vmem:[#allocation2 + $0x10] sm:$0xff]   ;;  %v138_v62 = vsub.s32 0, %v137_v61 }
  0x4f   :  { %230 = vmatprep.subr.bf16.mxu0 %v1515_v5  ;;  %v1536_v17 = vld [vmem:[#allocation2 + $0x8] sm:$0xff]   ;;  %1280 = vmatprep.subr.bf16.mxu1 %v1535_v16  ;;  %v1539_v22 = vld [vmem:[#allocation2 + $0x58] sm:$0xff]   ;;  %v94_v24 = vld [vmem:[%s2047_s0] sm:$0xff] }
  0x50   :  { %v1532_v23 = vld [vmem:[%s2048_s1 + $0x70] ss:$8 sps:$4 sm:$0xff]   ;;  %v95_v25 = vld [vmem:[%s2047_s0 + $0x8] sm:$0xff]  ;;  %v1541_v27 = vld [vmem:[#allocation2 + $0x60] sm:$0xff]  }
  0x51   :  { %v1540_v26 = vld [vmem:[#allocation2 + $0x18] sm:$0xff]   ;;  %v1542_v28 = vld [vmem:[#allocation2 + $0x20] sm:$0xff]   ;;  %v110_v29 = vpack.c.bf16 %v95_v25, %v94_v24  ;;  %v1543_v30 = vld [vmem:[#allocation2 + $0x68] sm:$0xff]  }
  0x52   :  { %231 = vmatpush1.bf16.msra.mxu0 %v1517_v6  ;;  %1281 = vmatpush3.bf16.msra.mxu1 %v1536_v17  ;;  %v96_v31 = vld [vmem:[%s2047_s0 + $0x10] sm:$0xff]  ;;  %v97_v32 = vld [vmem:[%s2047_s0 + $0x18] sm:$0xff]  ;;  %v98_v34 = vld [vmem:[%s2047_s0 + $0x20] sm:$0xff] }
  0x53   :  { %232 = vmatprep.subr.bf16.mxu0 %v1518_v7  ;;  %1282 = vmatprep.subr.bf16.mxu1 %v1537_v18  ;;  %v111_v33 = vpack.c.bf16 %v97_v32, %v96_v31  ;;  %v99_v35 = vld [vmem:[%s2047_s0 + $0x28] sm:$0xff]  ;;  %v100_v37 = vld [vmem:[%s2047_s0 + $0x30] sm:$0xff]  ;;  %v101_v38 = vld [vmem:[%s2047_s0 + $0x38] sm:$0xff] }
  0x54   :  { %v112_v36 = vpack.c.bf16 %v99_v35, %v98_v34  ;;  %v113_v39 = vpack.c.bf16 %v101_v38, %v100_v37  ;;  %v102_v40 = vld [vmem:[%s2047_s0 + $0x40] sm:$0xff]  ;;  %v103_v41 = vld [vmem:[%s2047_s0 + $0x48] sm:$0xff]  ;;  %v104_v43 = vld [vmem:[%s2047_s0 + $0x50] sm:$0xff] }
  0x55   :  { %v114_v42 = vpack.c.bf16 %v103_v41, %v102_v40  ;;  %v105_v44 = vld [vmem:[%s2047_s0 + $0x58] sm:$0xff]  ;;  %v106_v46 = vld [vmem:[%s2047_s0 + $0x60] sm:$0xff]  ;;  %v107_v47 = vld [vmem:[%s2047_s0 + $0x68] sm:$0xff] }
  0x56   :  { %233 = vmatpush1.bf16.msra.mxu0 %v1520_v8  ;;  %1283 = vmatpush3.bf16.msra.mxu1 %v1538_v21  ;;  %v115_v45 = vpack.c.bf16 %v105_v44, %v104_v43  ;;  %v116_v48 = vpack.c.bf16 %v107_v47, %v106_v46  ;;  %v108_v49 = vld [vmem:[%s2047_s0 + $0x70] sm:$0xff]  ;;  %v109_v50 = vld [vmem:[%s2047_s0 + $0x78] sm:$0xff]  ;;  %v1544_v52 = vld [vmem:[#allocation2 + $0x28] sm:$0xff]  }
  0x57   :  { %234 = vmatprep.subr.bf16.mxu0 %v1521_v9  ;;  %1284 = vmatprep.subr.bf16.mxu1 %v1539_v22  ;;  %v117_v51 = vpack.c.bf16 %v109_v50, %v108_v49  ;;  %v1545_v53 = vld [vmem:[#allocation2 + $0x70] sm:$0xff]   ;;  %v1547_v55 = vld [vmem:[#allocation2 + $0x78] sm:$0xff]   ;;  %v1549_v57 = vld [vmem:[#allocation4] sm:$0xff]  }
  0x58   :  { %v1546_v54 = vld [vmem:[#allocation2 + $0x30] sm:$0xff]   ;;  %v1548_v56 = vld [vmem:[#allocation2 + $0x38] sm:$0xff]   ;;  %v1550_v58 = vld [vmem:[#allocation4 + $0x8] sm:$0xff]  }
  0x59   :  { %v1551_v59 = vld [vmem:[#allocation4 + $0x10] sm:$0xff]   ;;  %v134_v63 = vld [vmem:[%s2049_s2] sm:$0x3] }
  0x5a   :  { %235 = vmatpush1.bf16.msra.mxu0 %v1523_v10  ;;  %1285 = vmatpush3.bf16.msra.mxu1 %v1540_v26  ;;  %v1915_v1 = vrot.slane %v134_v63, %v138_v62 }
  0x5b   :  { %236 = vmatprep.subr.bf16.mxu0 %v1524_v11  ;;  %1286 = vmatprep.subr.bf16.mxu1 %v1541_v27 }
  0x5e   :  { %237 = vmatpush1.bf16.msra.mxu0 %v1526_v13  ;;  %1287 = vmatpush3.bf16.msra.mxu1 %v1542_v28 }
  0x5f   :  { %238 = vmatprep.subr.bf16.mxu0 %v1527_v15  ;;  %1288 = vmatprep.subr.bf16.mxu1 %v1543_v30 }
  0x62   :  { %239 = vmatpush1.bf16.msra.mxu0 %v1529_v19  ;;  %1289 = vmatpush3.bf16.msra.mxu1 %v1544_v52 }
  0x63   :  { %240 = vmatprep.subr.bf16.mxu0 %v1530_v20  ;;  %1290 = vmatprep.subr.bf16.mxu1 %v1545_v53 }
  0x66   :  { %241 = vmatpush1.bf16.msra.mxu0 %v1532_v23  ;;  %1291 = vmatpush3.bf16.msra.mxu1 %v1546_v54 }
  0x67   :  { %1292 = vmatprep.subr.bf16.mxu1 %v1547_v55  ;;  %1390 = vmatprep.subr.bf16.mxu0 %v1549_v57 }
  0x69   :  { %259 = vmatmul.mubr.bf16.vlgmr.msra.gmra.mrb[0].mxu0 %v110_v29 }
  0x6a   :  { %268 = vmatprep.mubr.bf16.mxu0 %v1673_v0  ;;  %1293 = vmatpush3.bf16.msra.mxu1 %v1548_v56 }
  0x6b   :  { %1391 = vmatpush3.bf16.msra.mxu0 %v1549_v57 }
  0x6c   :  { %1392 = vmatprep.subr.bf16.mxu0 %v1550_v58 }
  0x6f   :  { %1393 = vmatpush3.bf16.msra.mxu0 %v1550_v58 }
  0x70   :  { %1394 = vmatprep.subr.bf16.mxu0 %v1551_v59 }
  0x71   :  { %269 = vmatmul.mubr.bf16.gmra.mrb[4].mxu0 %v111_v33 }
  0x72   :  { %278 = vmatprep.mubr.bf16.mxu0 %v1673_v0 }
  0x73   :  { %1395 = vmatpush3.bf16.msra.mxu0 %v1551_v59 }
  0x79   :  { %279 = vmatmul.mubr.bf16.gmra.mrb[8].mxu0 %v112_v36 }
  0x7a   :  { %288 = vmatprep.mubr.bf16.mxu0 %v1673_v0 }
  0x81   :  { %289 = vmatmul.mubr.bf16.gmra.mrb[12].mxu0 %v113_v39 }
  0x82   :  { %298 = vmatprep.mubr.bf16.mxu0 %v1673_v0 }
  0x89   :  { %299 = vmatmul.mubr.bf16.gmra.mrb[16].mxu0 %v114_v42 }
  0x8a   :  { %308 = vmatprep.mubr.bf16.mxu0 %v1673_v0 }
  0x91   :  { %309 = vmatmul.mubr.bf16.gmra.mrb[20].mxu0 %v115_v45 }
  0x92   :  { %318 = vmatprep.mubr.bf16.mxu0 %v1673_v0 }
  0x99   :  { %319 = vmatmul.mubr.bf16.gmra.mrb[24].mxu0 %v116_v48 }
  0x9a   :  { %328 = vmatprep.mubr.bf16.mxu0 %v1673_v0  ;;  %v142_v0 = vsub.s32 1, %v137_v61 }
  0x9c   :  { %v1917_v2 = vrot.slane %v134_v63, %v142_v0 }
  0xa1   :  { %329 = vmatmul.mubr.bf16.gmra.mrb[28].mxu0 %v117_v51 }
 0x13c   :  { %v260_v3 = vpop.f32.mrb[0].mxu0 }
 0x13d   :  { %v261_v4 = vadd.f32 %v260_v3, %v1915_v1  ;;  %v262_v5 = vpop.f32.mrb[1].mxu0 }
 0x13e   :  { %v263_v6 = vadd.f32 %v262_v5, %v1917_v2  ;;  %v264_v7 = vpop.f32.mrb[2].mxu0 }
 0x13f   :  { %v265_v8 = vadd.f32 %v264_v7, %v1915_v1  ;;  %v266_v9 = vpop.f32.mrb[3].mxu0  ;;  %v339_v11 = vmax.f32 %v261_v4, 0.0 }
 0x140   :  { %v267_v10 = vadd.f32 %v266_v9, %v1917_v2  ;;  %v340_v13 = vmax.f32 %v263_v6, 0.0 }
 0x141   :  { %v341_v12 = vmax.f32 %v265_v8, 0.0 }
 0x142   :  { %v342_v14 = vmax.f32 %v267_v10, 0.0 }
 0x143   :  { %v371_v15 = vpack.c.bf16 %v341_v12, %v339_v11 }
 0x144   :  { %v270_v16 = vpop.f32.mrb[4].mxu0  ;;  %v372_v17 = vpack.c.bf16 %v342_v14, %v340_v13 }
 0x145   :  { %v271_v18 = vadd.f32 %v270_v16, %v1915_v1  ;;  %v272_v19 = vpop.f32.mrb[5].mxu0 }
 0x146   :  { %v273_v20 = vadd.f32 %v272_v19, %v1917_v2  ;;  %v274_v21 = vpop.f32.mrb[6].mxu0  ;;  %554 = vmatprep.mubr.bf16.mxu1 %v372_v17 }
 0x147   :  { %v275_v22 = vadd.f32 %v274_v21, %v1915_v1  ;;  %v276_v23 = vpop.f32.mrb[7].mxu0  ;;  %555 = vmatmul.mubr.bf16.vlgmr.msra.gmra.mrb[0].mxu1 %v371_v15  ;;  %v343_v25 = vmax.f32 %v271_v18, 0.0 }
 0x148   :  { %v277_v24 = vadd.f32 %v276_v23, %v1917_v2  ;;  %v344_v27 = vmax.f32 %v273_v20, 0.0 }
 0x149   :  { %v345_v26 = vmax.f32 %v275_v22, 0.0 }
 0x14a   :  { %v346_v28 = vmax.f32 %v277_v24, 0.0 }
 0x14b   :  { %v373_v29 = vpack.c.bf16 %v345_v26, %v343_v25 }
 0x14c   :  { %v374_v30 = vpack.c.bf16 %v346_v28, %v344_v27  ;;  %v280_v31 = vpop.f32.mrb[8].mxu0 }
 0x14d   :  { %v281_v32 = vadd.f32 %v280_v31, %v1915_v1  ;;  %v282_v33 = vpop.f32.mrb[9].mxu0 }
 0x14e   :  { %v283_v34 = vadd.f32 %v282_v33, %v1917_v2  ;;  %v284_v35 = vpop.f32.mrb[10].mxu0  ;;  %562 = vmatprep.mubr.bf16.mxu1 %v374_v30 }
 0x14f   :  { %v285_v36 = vadd.f32 %v284_v35, %v1915_v1  ;;  %v286_v37 = vpop.f32.mrb[11].mxu0  ;;  %563 = vmatmul.mubr.bf16.gmra.mrb[4].mxu1 %v373_v29  ;;  %v347_v39 = vmax.f32 %v281_v32, 0.0 }
 0x150   :  { %v287_v38 = vadd.f32 %v286_v37, %v1917_v2  ;;  %v348_v41 = vmax.f32 %v283_v34, 0.0 }
 0x151   :  { %v349_v40 = vmax.f32 %v285_v36, 0.0 }
 0x152   :  { %v350_v42 = vmax.f32 %v287_v38, 0.0 }
 0x153   :  { %v375_v43 = vpack.c.bf16 %v349_v40, %v347_v39 }
 0x154   :  { %v376_v44 = vpack.c.bf16 %v350_v42, %v348_v41  ;;  %v290_v45 = vpop.f32.mrb[12].mxu0 }
 0x155   :  { %v291_v46 = vadd.f32 %v290_v45, %v1915_v1  ;;  %v292_v47 = vpop.f32.mrb[13].mxu0 }
 0x156   :  { %v293_v48 = vadd.f32 %v292_v47, %v1917_v2  ;;  %v294_v49 = vpop.f32.mrb[14].mxu0  ;;  %570 = vmatprep.mubr.bf16.mxu1 %v376_v44 }
 0x157   :  { %v295_v50 = vadd.f32 %v294_v49, %v1915_v1  ;;  %v296_v51 = vpop.f32.mrb[15].mxu0  ;;  %571 = vmatmul.mubr.bf16.gmra.mrb[8].mxu1 %v375_v43  ;;  %v351_v53 = vmax.f32 %v291_v46, 0.0 }
 0x158   :  { %v297_v52 = vadd.f32 %v296_v51, %v1917_v2  ;;  %v352_v55 = vmax.f32 %v293_v48, 0.0 }
 0x159   :  { %v353_v54 = vmax.f32 %v295_v50, 0.0 }
 0x15a   :  { %v354_v56 = vmax.f32 %v297_v52, 0.0 }
 0x15b   :  { %v377_v57 = vpack.c.bf16 %v353_v54, %v351_v53  ;;  %v1552_v53 = vld [vmem:[#allocation4 + $0x18] sm:$0xff]   ;;  %v1553_v54 = vld [vmem:[#allocation4 + $0x20] sm:$0xff]  }
 0x15c   :  { %v378_v58 = vpack.c.bf16 %v354_v56, %v352_v55  ;;  %v300_v59 = vpop.f32.mrb[16].mxu0  ;;  %1396 = vmatprep.subr.bf16.mxu0 %v1552_v53  ;;  %v1554_v55 = vld [vmem:[#allocation4 + $0x28] sm:$0xff]   ;;  %v1557_v56 = vld [vmem:[#allocation6] sm:$0xff]  }
 0x15d   :  { %v301_v60 = vadd.f32 %v300_v59, %v1915_v1  ;;  %v302_v61 = vpop.f32.mrb[17].mxu0  ;;  %1397 = vmatpush3.bf16.msra.mxu0 %v1552_v53  ;;  %1422 = vmatprep.subr.bf16.mxu1 %v1557_v56  ;;  %v1560_v59 = vld [vmem:[#allocation6 + $0x18] sm:$0xff]  }
 0x15e   :  { %v303_v62 = vadd.f32 %v302_v61, %v1917_v2  ;;  %v304_v63 = vpop.f32.mrb[18].mxu0  ;;  %578 = vmatprep.mubr.bf16.mxu1 %v378_v58  ;;  %1398 = vmatprep.subr.bf16.mxu0 %v1553_v54  ;;  %v1559_v58 = vld [vmem:[#allocation6 + $0x10] sm:$0xff]   ;;  %v1562_v61 = vld [vmem:[#allocation6 + $0x28] sm:$0xff]  }
 0x15f   :  { %v305_v0 = vadd.f32 %v304_v63, %v1915_v1  ;;  %v306_v3 = vpop.f32.mrb[19].mxu0  ;;  %579 = vmatmul.mubr.bf16.gmra.mrb[12].mxu1 %v377_v57  ;;  %v355_v5 = vmax.f32 %v301_v60, 0.0  ;;  %v1558_v57 = vld [vmem:[#allocation6 + $0x8] sm:$0xff]   ;;  %v1561_v60 = vld [vmem:[#allocation6 + $0x20] sm:$0xff]  }
 0x160   :  { %v307_v4 = vadd.f32 %v306_v3, %v1917_v2  ;;  %v356_v7 = vmax.f32 %v303_v62, 0.0  ;;  %1423 = vmatpush3.bf16.msra.mxu1 %v1557_v56  ;;  %v1954_v63 = vld [vmem:[%s2051_s4] ss:$0 sm:$0xff] }
 0x161   :  { %v357_v6 = vmax.f32 %v305_v0, 0.0  ;;  %1399 = vmatpush3.bf16.msra.mxu0 %v1553_v54  ;;  %1424 = vmatprep.subr.bf16.mxu1 %v1558_v57 }
 0x162   :  { %v358_v8 = vmax.f32 %v307_v4, 0.0  ;;  %1400 = vmatprep.subr.bf16.mxu0 %v1554_v55 }
 0x163   :  { %v379_v9 = vpack.c.bf16 %v357_v6, %v355_v5 }
 0x164   :  { %v380_v10 = vpack.c.bf16 %v358_v8, %v356_v7  ;;  %v310_v11 = vpop.f32.mrb[20].mxu0  ;;  %1425 = vmatpush3.bf16.msra.mxu1 %v1558_v57 }
 0x165   :  { %v311_v12 = vadd.f32 %v310_v11, %v1915_v1  ;;  %v312_v13 = vpop.f32.mrb[21].mxu0  ;;  %1401 = vmatpush3.bf16.msra.mxu0 %v1554_v55  ;;  %1426 = vmatprep.subr.bf16.mxu1 %v1559_v58 }
 0x166   :  { %v313_v14 = vadd.f32 %v312_v13, %v1917_v2  ;;  %v314_v15 = vpop.f32.mrb[22].mxu0  ;;  %586 = vmatprep.mubr.bf16.mxu1 %v380_v10 }
 0x167   :  { %v315_v16 = vadd.f32 %v314_v15, %v1915_v1  ;;  %v316_v17 = vpop.f32.mrb[23].mxu0  ;;  %587 = vmatmul.mubr.bf16.gmra.mrb[16].mxu1 %v379_v9  ;;  %v359_v19 = vmax.f32 %v311_v12, 0.0 }
 0x168   :  { %v317_v18 = vadd.f32 %v316_v17, %v1917_v2  ;;  %v360_v21 = vmax.f32 %v313_v14, 0.0  ;;  %1427 = vmatpush3.bf16.msra.mxu1 %v1559_v58 }
 0x169   :  { %v361_v20 = vmax.f32 %v315_v16, 0.0  ;;  %1428 = vmatprep.subr.bf16.mxu1 %v1560_v59 }
 0x16a   :  { %v362_v22 = vmax.f32 %v317_v18, 0.0 }
 0x16b   :  { %v381_v23 = vpack.c.bf16 %v361_v20, %v359_v19 }
 0x16c   :  { %v382_v24 = vpack.c.bf16 %v362_v22, %v360_v21  ;;  %v320_v25 = vpop.f32.mrb[24].mxu0  ;;  %1429 = vmatpush3.bf16.msra.mxu1 %v1560_v59 }
 0x16d   :  { %v321_v26 = vadd.f32 %v320_v25, %v1915_v1  ;;  %v322_v27 = vpop.f32.mrb[25].mxu0  ;;  %1430 = vmatprep.subr.bf16.mxu1 %v1561_v60 }
 0x16e   :  { %v323_v28 = vadd.f32 %v322_v27, %v1917_v2  ;;  %v324_v29 = vpop.f32.mrb[26].mxu0  ;;  %594 = vmatprep.mubr.bf16.mxu1 %v382_v24 }
 0x16f   :  { %v325_v30 = vadd.f32 %v324_v29, %v1915_v1  ;;  %v326_v31 = vpop.f32.mrb[27].mxu0  ;;  %595 = vmatmul.mubr.bf16.gmra.mrb[20].mxu1 %v381_v23  ;;  %v363_v33 = vmax.f32 %v321_v26, 0.0 }
 0x170   :  { %v327_v32 = vadd.f32 %v326_v31, %v1917_v2  ;;  %v364_v35 = vmax.f32 %v323_v28, 0.0  ;;  %1431 = vmatpush3.bf16.msra.mxu1 %v1561_v60 }
 0x171   :  { %v365_v34 = vmax.f32 %v325_v30, 0.0  ;;  %1432 = vmatprep.subr.bf16.mxu1 %v1562_v61 }
 0x172   :  { %v366_v36 = vmax.f32 %v327_v32, 0.0 }
 0x173   :  { %v383_v37 = vpack.c.bf16 %v365_v34, %v363_v33 }
 0x174   :  { %v384_v38 = vpack.c.bf16 %v366_v36, %v364_v35  ;;  %v330_v39 = vpop.f32.mrb[28].mxu0  ;;  %1433 = vmatpush3.bf16.msra.mxu1 %v1562_v61 }
 0x175   :  { %v331_v40 = vadd.f32 %v330_v39, %v1915_v1  ;;  %v332_v41 = vpop.f32.mrb[29].mxu0 }
 0x176   :  { %v333_v42 = vadd.f32 %v332_v41, %v1917_v2  ;;  %v334_v43 = vpop.f32.mrb[30].mxu0  ;;  %602 = vmatprep.mubr.bf16.mxu1 %v384_v38 }
 0x177   :  { %v335_v44 = vadd.f32 %v334_v43, %v1915_v1  ;;  %v336_v45 = vpop.f32.mrb[31].mxu0  ;;  %603 = vmatmul.mubr.bf16.gmra.mrb[24].mxu1 %v383_v37  ;;  %v367_v47 = vmax.f32 %v331_v40, 0.0  ;;  %v1555_v1 = vld [vmem:[#allocation4 + $0x30] sm:$0xff]  }
 0x178   :  { %v337_v46 = vadd.f32 %v336_v45, %v1917_v2  ;;  %v368_v49 = vmax.f32 %v333_v42, 0.0  ;;  %1402 = vmatprep.subr.bf16.mxu0 %v1555_v1  ;;  %v1556_v2 = vld [vmem:[#allocation4 + $0x38] sm:$0xff]  }
 0x179   :  { %v369_v48 = vmax.f32 %v335_v44, 0.0  ;;  %1403 = vmatpush3.bf16.msra.mxu0 %v1555_v1 }
 0x17a   :  { %v370_v50 = vmax.f32 %v337_v46, 0.0  ;;  %1404 = vmatprep.subr.bf16.mxu0 %v1556_v2 }
 0x17b   :  { %v385_v51 = vpack.c.bf16 %v369_v48, %v367_v47 }
 0x17c   :  { %v386_v52 = vpack.c.bf16 %v370_v50, %v368_v49 }
 0x17d   :  { %1405 = vmatpush3.bf16.msra.mxu0 %v1556_v2 }
 0x17e   :  { %610 = vmatprep.mubr.bf16.mxu1 %v386_v52 }
 0x17f   :  { %611 = vmatmul.mubr.bf16.gmra.mrb[28].mxu1 %v385_v51 }
 0x21a   :  { %v1294_v62 = vpop.f32.mrb[0].mxu1 }
 0x21b   :  { %v1295_v0 = vpop.f32.mrb[1].mxu1 }
 0x21c   :  { %v1296_v3 = vadd.f32 %v1295_v0, %v1294_v62  ;;  %v1297_v4 = vpop.f32.mrb[2].mxu1 }
 0x21d   :  { %v1298_v5 = vpop.f32.mrb[3].mxu1 }
 0x21e   :  { %v557_v6 = vadd.f32 %v1296_v3, %v1954_v63  ;;  %v1299_v7 = vadd.f32 %v1298_v5, %v1297_v4 }
 0x220   :  { %v560_v8 = vadd.f32 %v1299_v7, %v1954_v63  ;;  %v619_v9 = vmax.f32 %v557_v6, 0.0 }
 0x222   :  { %v620_v10 = vmax.f32 %v560_v8, 0.0  ;;  %v1300_v11 = vpop.f32.mrb[4].mxu1 }
 0x223   :  { %v1301_v12 = vpop.f32.mrb[5].mxu1 }
 0x224   :  { %v1302_v13 = vadd.f32 %v1301_v12, %v1300_v11  ;;  %v1303_v14 = vpop.f32.mrb[6].mxu1  ;;  %v635_v15 = vpack.c.bf16 %v620_v10, %v619_v9 }
 0x225   :  { %v1304_v16 = vpop.f32.mrb[7].mxu1 }
 0x226   :  { %v565_v17 = vadd.f32 %v1302_v13, %v1954_v63  ;;  %v1305_v18 = vadd.f32 %v1304_v16, %v1303_v14  ;;  %1406 = vmatprep.mubr.bf16.mxu0 %v635_v15 }
 0x228   :  { %v568_v19 = vadd.f32 %v1305_v18, %v1954_v63  ;;  %v621_v20 = vmax.f32 %v565_v17, 0.0 }
 0x22a   :  { %v622_v21 = vmax.f32 %v568_v19, 0.0  ;;  %v1306_v22 = vpop.f32.mrb[8].mxu1 }
 0x22b   :  { %v1307_v23 = vpop.f32.mrb[9].mxu1 }
 0x22c   :  { %v636_v24 = vpack.c.bf16 %v622_v21, %v621_v20  ;;  %v1308_v25 = vadd.f32 %v1307_v23, %v1306_v22  ;;  %v1309_v26 = vpop.f32.mrb[10].mxu1 }
 0x22d   :  { %v1310_v27 = vpop.f32.mrb[11].mxu1 }
 0x22e   :  { %v573_v28 = vadd.f32 %v1308_v25, %v1954_v63  ;;  %v1311_v29 = vadd.f32 %v1310_v27, %v1309_v26  ;;  %1407 = vmatmul.mubr.bf16.vlgmr.msra.gmra.mrb[32].mxu0 %v636_v24  ;;  %v1563_v26 = vld [vmem:[#allocation6 + $0x30] sm:$0xff]   ;;  %v1564_v27 = vld [vmem:[#allocation6 + $0x38] sm:$0xff]  }
 0x22f   :  { %1434 = vmatprep.subr.bf16.mxu1 %v1563_v26 }
 0x230   :  { %v576_v30 = vadd.f32 %v1311_v29, %v1954_v63  ;;  %v623_v31 = vmax.f32 %v573_v28, 0.0  ;;  %1435 = vmatpush3.bf16.msra.mxu1 %v1563_v26  ;;  %v1565_v28 = vld [vmem:[#allocation7] sm:$0xff]   ;;  %v1566_v29 = vld [vmem:[#allocation7 + $0x8] sm:$0xff]  }
 0x231   :  { %1436 = vmatprep.subr.bf16.mxu1 %v1564_v27  ;;  %1454 = vmatprep.subr.bf16.mxu0 %v1565_v28 }
 0x232   :  { %v624_v32 = vmax.f32 %v576_v30, 0.0  ;;  %v1312_v33 = vpop.f32.mrb[12].mxu1  ;;  %1455 = vmatpush3.bf16.msra.mxu0 %v1565_v28  ;;  %v1567_v30 = vld [vmem:[#allocation7 + $0x10] sm:$0xff]  }
 0x233   :  { %v1313_v34 = vpop.f32.mrb[13].mxu1  ;;  %1456 = vmatprep.subr.bf16.mxu0 %v1566_v29 }
 0x234   :  { %v1314_v35 = vadd.f32 %v1313_v34, %v1312_v33  ;;  %v1315_v36 = vpop.f32.mrb[14].mxu1  ;;  %v637_v37 = vpack.c.bf16 %v624_v32, %v623_v31  ;;  %1437 = vmatpush3.bf16.msra.mxu1 %v1564_v27  ;;  %v1569_v31 = vld [vmem:[#allocation7 + $0x20] sm:$0xff]   ;;  %v1570_v32 = vld [vmem:[#allocation7 + $0x28] sm:$0xff]   ;;  %v1571_v27 = vld [vmem:[#allocation7 + $0x30] sm:$0xff]  }
 0x235   :  { %v1316_v38 = vpop.f32.mrb[15].mxu1  ;;  %1486 = vmatprep.subr.bf16.mxu1 %v1565_v28  ;;  %v1975_v33 = vld [vmem:[%s2053_s6] ss:$0 sm:$0xff] }
 0x236   :  { %v581_v39 = vadd.f32 %v1314_v35, %v1954_v63  ;;  %v1317_v40 = vadd.f32 %v1316_v38, %v1315_v36  ;;  %1410 = vmatprep.mubr.bf16.mxu0 %v637_v37  ;;  %1457 = vmatpush3.bf16.msra.mxu0 %v1566_v29 }
 0x237   :  { %1458 = vmatprep.subr.bf16.mxu0 %v1567_v30 }
 0x238   :  { %v584_v41 = vadd.f32 %v1317_v40, %v1954_v63  ;;  %v625_v42 = vmax.f32 %v581_v39, 0.0 }
 0x23a   :  { %v626_v43 = vmax.f32 %v584_v41, 0.0  ;;  %v1318_v44 = vpop.f32.mrb[16].mxu1  ;;  %1459 = vmatpush3.bf16.msra.mxu0 %v1567_v30 }
 0x23b   :  { %v1319_v45 = vpop.f32.mrb[17].mxu1 }
 0x23c   :  { %v1320_v46 = vadd.f32 %v1319_v45, %v1318_v44  ;;  %v1321_v47 = vpop.f32.mrb[18].mxu1  ;;  %v638_v48 = vpack.c.bf16 %v626_v43, %v625_v42 }
 0x23d   :  { %v1322_v49 = vpop.f32.mrb[19].mxu1 }
 0x23e   :  { %v589_v50 = vadd.f32 %v1320_v46, %v1954_v63  ;;  %v1323_v51 = vadd.f32 %v1322_v49, %v1321_v47  ;;  %1411 = vmatmul.mubr.bf16.gmra.mrb[36].mxu0 %v638_v48 }
 0x240   :  { %v592_v52 = vadd.f32 %v1323_v51, %v1954_v63  ;;  %v627_v53 = vmax.f32 %v589_v50, 0.0 }
 0x242   :  { %v628_v54 = vmax.f32 %v592_v52, 0.0  ;;  %v1324_v55 = vpop.f32.mrb[20].mxu1 }
 0x243   :  { %v1325_v1 = vpop.f32.mrb[21].mxu1 }
 0x244   :  { %v1326_v2 = vadd.f32 %v1325_v1, %v1324_v55  ;;  %v1327_v56 = vpop.f32.mrb[22].mxu1  ;;  %v639_v57 = vpack.c.bf16 %v628_v54, %v627_v53 }
 0x245   :  { %v1328_v58 = vpop.f32.mrb[23].mxu1 }
 0x246   :  { %v597_v59 = vadd.f32 %v1326_v2, %v1954_v63  ;;  %v1329_v60 = vadd.f32 %v1328_v58, %v1327_v56  ;;  %1414 = vmatprep.mubr.bf16.mxu0 %v639_v57 }
 0x248   :  { %v600_v61 = vadd.f32 %v1329_v60, %v1954_v63  ;;  %v629_v62 = vmax.f32 %v597_v59, 0.0 }
 0x24a   :  { %v630_v0 = vmax.f32 %v600_v61, 0.0  ;;  %v1330_v3 = vpop.f32.mrb[24].mxu1 }
 0x24b   :  { %v1331_v4 = vpop.f32.mrb[25].mxu1 }
 0x24c   :  { %v1332_v5 = vadd.f32 %v1331_v4, %v1330_v3  ;;  %v1333_v6 = vpop.f32.mrb[26].mxu1  ;;  %v640_v7 = vpack.c.bf16 %v630_v0, %v629_v62 }
 0x24d   :  { %v1334_v8 = vpop.f32.mrb[27].mxu1 }
 0x24e   :  { %v605_v9 = vadd.f32 %v1332_v5, %v1954_v63  ;;  %v1335_v10 = vadd.f32 %v1334_v8, %v1333_v6  ;;  %1415 = vmatmul.mubr.bf16.gmra.mrb[40].mxu0 %v640_v7 }
 0x250   :  { %v608_v11 = vadd.f32 %v1335_v10, %v1954_v63  ;;  %v631_v12 = vmax.f32 %v605_v9, 0.0 }
 0x252   :  { %v632_v13 = vmax.f32 %v608_v11, 0.0  ;;  %v1336_v14 = vpop.f32.mrb[28].mxu1 }
 0x253   :  { %v1337_v15 = vpop.f32.mrb[29].mxu1 }
 0x254   :  { %v1338_v16 = vadd.f32 %v1337_v15, %v1336_v14  ;;  %v1339_v17 = vpop.f32.mrb[30].mxu1  ;;  %v641_v18 = vpack.c.bf16 %v632_v13, %v631_v12 }
 0x255   :  { %v1340_v19 = vpop.f32.mrb[31].mxu1 }
 0x256   :  { %v613_v20 = vadd.f32 %v1338_v16, %v1954_v63  ;;  %v1341_v21 = vadd.f32 %v1340_v19, %v1339_v17  ;;  %1418 = vmatprep.mubr.bf16.mxu0 %v641_v18 }
 0x258   :  { %v616_v22 = vadd.f32 %v1341_v21, %v1954_v63  ;;  %v633_v23 = vmax.f32 %v613_v20, 0.0  ;;  %v1568_v63 = vld [vmem:[#allocation7 + $0x18] sm:$0xff]  }
 0x259   :  { %1460 = vmatprep.subr.bf16.mxu0 %v1568_v63 }
 0x25a   :  { %v634_v24 = vmax.f32 %v616_v22, 0.0  ;;  %1461 = vmatpush3.bf16.msra.mxu0 %v1568_v63 }
 0x25b   :  { %1462 = vmatprep.subr.bf16.mxu0 %v1569_v31 }
 0x25c   :  { %v642_v25 = vpack.c.bf16 %v634_v24, %v633_v23 }
 0x25e   :  { %1419 = vmatmul.mubr.bf16.gmra.mrb[44].mxu0 %v642_v25 }
 0x25f   :  { %1463 = vmatpush3.bf16.msra.mxu0 %v1569_v31 }
 0x260   :  { %1464 = vmatprep.subr.bf16.mxu0 %v1570_v32 }
 0x263   :  { %1465 = vmatpush3.bf16.msra.mxu0 %v1570_v32 }
 0x264   :  { %1466 = vmatprep.subr.bf16.mxu0 %v1571_v27 }
 0x267   :  { %1467 = vmatpush3.bf16.msra.mxu0 %v1571_v27 }
 0x301   :  { %v1408_v34 = vpop.f32.mrb[32].mxu0 }
 0x302   :  { %v757_v35 = vadd.f32 %v1408_v34, %v1975_v33  ;;  %v748_v36 = vpop.f32.mrb[33].mxu0 }
 0x303   :  { %v749_v37 = vadd.f32 %v1975_v33, %v748_v36  ;;  %v1409_v38 = vpop.f32.mrb[34].mxu0 }
 0x304   :  { %v760_v39 = vadd.f32 %v1409_v38, %v1975_v33  ;;  %v751_v40 = vpop.f32.mrb[35].mxu0  ;;  %v813_v42 = vmax.f32 %v757_v35, 0.0 }
 0x305   :  { %v752_v41 = vadd.f32 %v1975_v33, %v751_v40  ;;  %v811_v44 = vmax.f32 %v749_v37, 0.0 }
 0x306   :  { %v814_v43 = vmax.f32 %v760_v39, 0.0 }
 0x307   :  { %v812_v45 = vmax.f32 %v752_v41, 0.0 }
 0x308   :  { %v828_v46 = vpack.c.bf16 %v814_v43, %v813_v42 }
 0x309   :  { %v827_v47 = vpack.c.bf16 %v812_v45, %v811_v44 }
 0x30b   :  { %1438 = vmatprep.mubr.bf16.mxu1 %v827_v47 }
 0x30c   :  { %1439 = vmatmul.mubr.bf16.vlgmr.msra.gmra.mrb[32].mxu1 %v828_v46 }
 0x30d   :  { %1494 = vmatpush3.bf16.msra.mxu1 %v1565_v28  ;;  %v1572_v28 = vld [vmem:[#allocation7 + $0x38] sm:$0xff]  }
 0x30e   :  { %1487 = vmatprep.subr.bf16.mxu1 %v1566_v29  ;;  %1468 = vmatprep.subr.bf16.mxu0 %v1572_v28 }
 0x30f   :  { %1469 = vmatpush3.bf16.msra.mxu0 %v1572_v28 }
 0x311   :  { %v1412_v48 = vpop.f32.mrb[36].mxu0  ;;  %1495 = vmatpush3.bf16.msra.mxu1 %v1566_v29  ;;  %v1260_v29 = vld [vmem:[%s2055_s8] ss:$0 sm:$0xff] }
 0x312   :  { %v773_v49 = vadd.f32 %v1412_v48, %v1975_v33  ;;  %v764_v50 = vpop.f32.mrb[37].mxu0  ;;  %1488 = vmatprep.subr.bf16.mxu1 %v1567_v30 }
 0x313   :  { %v765_v51 = vadd.f32 %v1975_v33, %v764_v50  ;;  %v1413_v52 = vpop.f32.mrb[38].mxu0 }
 0x314   :  { %v776_v53 = vadd.f32 %v1413_v52, %v1975_v33  ;;  %v767_v54 = vpop.f32.mrb[39].mxu0  ;;  %v817_v1 = vmax.f32 %v773_v49, 0.0 }
 0x315   :  { %v768_v55 = vadd.f32 %v1975_v33, %v767_v54  ;;  %1496 = vmatpush3.bf16.msra.mxu1 %v1567_v30  ;;  %v815_v56 = vmax.f32 %v765_v51, 0.0 }
 0x316   :  { %v818_v2 = vmax.f32 %v776_v53, 0.0  ;;  %1489 = vmatprep.subr.bf16.mxu1 %v1568_v63 }
 0x317   :  { %v816_v57 = vmax.f32 %v768_v55, 0.0 }
 0x318   :  { %v830_v58 = vpack.c.bf16 %v818_v2, %v817_v1 }
 0x319   :  { %v829_v59 = vpack.c.bf16 %v816_v57, %v815_v56  ;;  %1497 = vmatpush3.bf16.msra.mxu1 %v1568_v63 }
 0x31a   :  { %1490 = vmatprep.subr.bf16.mxu1 %v1569_v31 }
 0x31b   :  { %1442 = vmatprep.mubr.bf16.mxu1 %v829_v59 }
 0x31c   :  { %1443 = vmatmul.mubr.bf16.gmra.mrb[36].mxu1 %v830_v58 }
 0x31d   :  { %1498 = vmatpush3.bf16.msra.mxu1 %v1569_v31 }
 0x31e   :  { %1491 = vmatprep.subr.bf16.mxu1 %v1570_v32 }
 0x321   :  { %v1416_v60 = vpop.f32.mrb[40].mxu0  ;;  %1499 = vmatpush3.bf16.msra.mxu1 %v1570_v32 }
 0x322   :  { %v789_v61 = vadd.f32 %v1416_v60, %v1975_v33  ;;  %v780_v62 = vpop.f32.mrb[41].mxu0  ;;  %1492 = vmatprep.subr.bf16.mxu1 %v1571_v27 }
 0x323   :  { %v781_v0 = vadd.f32 %v1975_v33, %v780_v62  ;;  %v1417_v3 = vpop.f32.mrb[42].mxu0 }
 0x324   :  { %v792_v4 = vadd.f32 %v1417_v3, %v1975_v33  ;;  %v783_v5 = vpop.f32.mrb[43].mxu0  ;;  %v821_v7 = vmax.f32 %v789_v61, 0.0 }
 0x325   :  { %v784_v6 = vadd.f32 %v1975_v33, %v783_v5  ;;  %v819_v9 = vmax.f32 %v781_v0, 0.0  ;;  %1500 = vmatpush3.bf16.msra.mxu1 %v1571_v27 }
 0x326   :  { %v822_v8 = vmax.f32 %v792_v4, 0.0  ;;  %1493 = vmatprep.subr.bf16.mxu1 %v1572_v28 }
 0x327   :  { %v820_v10 = vmax.f32 %v784_v6, 0.0 }
 0x328   :  { %v832_v11 = vpack.c.bf16 %v822_v8, %v821_v7 }
 0x329   :  { %v831_v12 = vpack.c.bf16 %v820_v10, %v819_v9  ;;  %1501 = vmatpush3.bf16.msra.mxu1 %v1572_v28 }
 0x32b   :  { %1446 = vmatprep.mubr.bf16.mxu1 %v831_v12 }
 0x32c   :  { %1447 = vmatmul.mubr.bf16.gmra.mrb[40].mxu1 %v832_v11 }
 0x331   :  { %v1420_v13 = vpop.f32.mrb[44].mxu0 }
 0x332   :  { %v805_v14 = vadd.f32 %v1420_v13, %v1975_v33  ;;  %v796_v15 = vpop.f32.mrb[45].mxu0 }
 0x333   :  { %v797_v16 = vadd.f32 %v1975_v33, %v796_v15  ;;  %v1421_v17 = vpop.f32.mrb[46].mxu0 }
 0x334   :  { %v808_v18 = vadd.f32 %v1421_v17, %v1975_v33  ;;  %v799_v19 = vpop.f32.mrb[47].mxu0  ;;  %v825_v21 = vmax.f32 %v805_v14, 0.0 }
 0x335   :  { %v800_v20 = vadd.f32 %v1975_v33, %v799_v19  ;;  %v823_v23 = vmax.f32 %v797_v16, 0.0 }
 0x336   :  { %v826_v22 = vmax.f32 %v808_v18, 0.0 }
 0x337   :  { %v824_v24 = vmax.f32 %v800_v20, 0.0 }
 0x338   :  { %v834_v25 = vpack.c.bf16 %v826_v22, %v825_v21  ;;  %v1269_v22 = vld [vmem:[%s2057_s10] ss:$0 sm:$0xff] }
 0x339   :  { %v833_v26 = vpack.c.bf16 %v824_v24, %v823_v23 }
 0x33b   :  { %1450 = vmatprep.mubr.bf16.mxu1 %v833_v26 }
 0x33c   :  { %1451 = vmatmul.mubr.bf16.gmra.mrb[44].mxu1 %v834_v25 }
 0x3df   :  { %v1440_v30 = vpop.f32.mrb[32].mxu1 }
 0x3e0   :  { %v949_v63 = vadd.f32 %v1440_v30, %v1260_v29  ;;  %v940_v31 = vpop.f32.mrb[33].mxu1 }
 0x3e1   :  { %v941_v32 = vadd.f32 %v1260_v29, %v940_v31  ;;  %v1441_v33 = vpop.f32.mrb[34].mxu1 }
 0x3e2   :  { %v952_v34 = vadd.f32 %v1441_v33, %v1260_v29  ;;  %v943_v35 = vpop.f32.mrb[35].mxu1  ;;  %v1005_v37 = vmax.f32 %v949_v63, 0.0 }
 0x3e3   :  { %v944_v36 = vadd.f32 %v1260_v29, %v943_v35  ;;  %v1003_v39 = vmax.f32 %v941_v32, 0.0 }
 0x3e4   :  { %v1006_v38 = vmax.f32 %v952_v34, 0.0 }
 0x3e5   :  { %v1004_v40 = vmax.f32 %v944_v36, 0.0 }
 0x3e6   :  { %v1020_v41 = vpack.c.bf16 %v1006_v38, %v1005_v37 }
 0x3e7   :  { %v1019_v42 = vpack.c.bf16 %v1004_v40, %v1003_v39 }
 0x3e9   :  { %1470 = vmatprep.mubr.bf16.mxu0 %v1019_v42 }
 0x3ea   :  { %1471 = vmatmul.mubr.bf16.vlgmr.msra.gmra.mrb[48].mxu0 %v1020_v41 }
 0x3ef   :  { %v1444_v43 = vpop.f32.mrb[36].mxu1 }
 0x3f0   :  { %v965_v44 = vadd.f32 %v1444_v43, %v1260_v29  ;;  %v956_v45 = vpop.f32.mrb[37].mxu1 }
 0x3f1   :  { %v957_v46 = vadd.f32 %v1260_v29, %v956_v45  ;;  %v1445_v47 = vpop.f32.mrb[38].mxu1 }
 0x3f2   :  { %v968_v48 = vadd.f32 %v1445_v47, %v1260_v29  ;;  %v959_v49 = vpop.f32.mrb[39].mxu1  ;;  %v1009_v51 = vmax.f32 %v965_v44, 0.0 }
 0x3f3   :  { %v960_v50 = vadd.f32 %v1260_v29, %v959_v49  ;;  %v1007_v53 = vmax.f32 %v957_v46, 0.0 }
 0x3f4   :  { %v1010_v52 = vmax.f32 %v968_v48, 0.0 }
 0x3f5   :  { %v1008_v54 = vmax.f32 %v960_v50, 0.0 }
 0x3f6   :  { %v1022_v55 = vpack.c.bf16 %v1010_v52, %v1009_v51 }
 0x3f7   :  { %v1021_v1 = vpack.c.bf16 %v1008_v54, %v1007_v53 }
 0x3f9   :  { %1474 = vmatprep.mubr.bf16.mxu0 %v1021_v1 }
 0x3fa   :  { %1475 = vmatmul.mubr.bf16.gmra.mrb[52].mxu0 %v1022_v55 }
 0x3ff   :  { %v1448_v2 = vpop.f32.mrb[40].mxu1 }
 0x400   :  { %v981_v56 = vadd.f32 %v1448_v2, %v1260_v29  ;;  %v972_v57 = vpop.f32.mrb[41].mxu1 }
 0x401   :  { %v973_v58 = vadd.f32 %v1260_v29, %v972_v57  ;;  %v1449_v59 = vpop.f32.mrb[42].mxu1 }
 0x402   :  { %v984_v60 = vadd.f32 %v1449_v59, %v1260_v29  ;;  %v975_v61 = vpop.f32.mrb[43].mxu1  ;;  %v1013_v0 = vmax.f32 %v981_v56, 0.0 }
 0x403   :  { %v976_v62 = vadd.f32 %v1260_v29, %v975_v61  ;;  %v1011_v4 = vmax.f32 %v973_v58, 0.0 }
 0x404   :  { %v1014_v3 = vmax.f32 %v984_v60, 0.0 }
 0x405   :  { %v1012_v5 = vmax.f32 %v976_v62, 0.0 }
 0x406   :  { %v1024_v6 = vpack.c.bf16 %v1014_v3, %v1013_v0 }
 0x407   :  { %v1023_v7 = vpack.c.bf16 %v1012_v5, %v1011_v4 }
 0x409   :  { %1478 = vmatprep.mubr.bf16.mxu1 %v1023_v7 }
 0x40a   :  { %1479 = vmatmul.mubr.bf16.vlgmr.msra.gmra.mrb[48].mxu1 %v1024_v6 }
 0x40f   :  { %v1452_v8 = vpop.f32.mrb[44].mxu1 }
 0x410   :  { %v997_v9 = vadd.f32 %v1452_v8, %v1260_v29  ;;  %v988_v10 = vpop.f32.mrb[45].mxu1 }
 0x411   :  { %v989_v11 = vadd.f32 %v1260_v29, %v988_v10  ;;  %v1453_v12 = vpop.f32.mrb[46].mxu1 }
 0x412   :  { %v1000_v13 = vadd.f32 %v1453_v12, %v1260_v29  ;;  %v991_v14 = vpop.f32.mrb[47].mxu1  ;;  %v1017_v16 = vmax.f32 %v997_v9, 0.0 }
 0x413   :  { %v992_v15 = vadd.f32 %v1260_v29, %v991_v14  ;;  %v1015_v18 = vmax.f32 %v989_v11, 0.0 }
 0x414   :  { %v1018_v17 = vmax.f32 %v1000_v13, 0.0 }
 0x415   :  { %v1016_v19 = vmax.f32 %v992_v15, 0.0 }
 0x416   :  { %v1026_v20 = vpack.c.bf16 %v1018_v17, %v1017_v16 }
 0x417   :  { %v1025_v21 = vpack.c.bf16 %v1016_v19, %v1015_v18 }
 0x419   :  { %1482 = vmatprep.mubr.bf16.mxu1 %v1025_v21 }
 0x41a   :  { %1483 = vmatmul.mubr.bf16.gmra.mrb[52].mxu1 %v1026_v20 }
 0x4bd   :  { %v1472_v23 = vpop.f32.mrb[48].mxu0 }
 0x4be   :  { %v1141_v24 = vadd.f32 %v1472_v23, %v1269_v22  ;;  %v1132_v25 = vpop.f32.mrb[49].mxu0 }
 0x4bf   :  { %v1133_v26 = vadd.f32 %v1269_v22, %v1132_v25  ;;  %v1473_v27 = vpop.f32.mrb[50].mxu0 }
 0x4c0   :  { %1197 = vst [vmem:[%s2058_s11 + $0x10] sm:$0xff] %v1141_v24  ;;  %v1144_v28 = vadd.f32 %v1473_v27, %v1269_v22  ;;  %v1135_v29 = vpop.f32.mrb[51].mxu0 }
 0x4c1   :  { %1195 = vst [vmem:[%s2058_s11] sm:$0xff] %v1133_v26  ;;  %v1136_v30 = vadd.f32 %v1269_v22, %v1135_v29 }
 0x4c2   :  { %1198 = vst [vmem:[%s2058_s11 + $0x18] sm:$0xff] %v1144_v28 }
 0x4c3   :  { %1196 = vst [vmem:[%s2058_s11 + $0x8] sm:$0xff] %v1136_v30 }
 0x4cd   :  { %v1476_v63 = vpop.f32.mrb[52].mxu0 }
 0x4ce   :  { %v1157_v31 = vadd.f32 %v1476_v63, %v1269_v22  ;;  %v1148_v32 = vpop.f32.mrb[53].mxu0 }
 0x4cf   :  { %v1149_v33 = vadd.f32 %v1269_v22, %v1148_v32  ;;  %v1477_v34 = vpop.f32.mrb[54].mxu0 }
 0x4d0   :  { %1201 = vst [vmem:[%s2058_s11 + $0x30] sm:$0xff] %v1157_v31  ;;  %v1160_v35 = vadd.f32 %v1477_v34, %v1269_v22  ;;  %v1151_v36 = vpop.f32.mrb[55].mxu0 }
 0x4d1   :  { %1199 = vst [vmem:[%s2058_s11 + $0x20] sm:$0xff] %v1149_v33  ;;  %v1152_v37 = vadd.f32 %v1269_v22, %v1151_v36 }
 0x4d2   :  { %1202 = vst [vmem:[%s2058_s11 + $0x38] sm:$0xff] %v1160_v35 }
 0x4d3   :  { %1200 = vst [vmem:[%s2058_s11 + $0x28] sm:$0xff] %v1152_v37 }
 0x4dd   :  { %v1480_v38 = vpop.f32.mrb[48].mxu1 }
 0x4de   :  { %v1173_v39 = vadd.f32 %v1480_v38, %v1269_v22  ;;  %v1164_v40 = vpop.f32.mrb[49].mxu1 }
 0x4df   :  { %v1165_v41 = vadd.f32 %v1269_v22, %v1164_v40  ;;  %v1481_v42 = vpop.f32.mrb[50].mxu1 }
 0x4e0   :  { %1205 = vst [vmem:[%s2058_s11 + $0x50] sm:$0xff] %v1173_v39  ;;  %v1176_v43 = vadd.f32 %v1481_v42, %v1269_v22  ;;  %v1167_v44 = vpop.f32.mrb[51].mxu1 }
 0x4e1   :  { %1203 = vst [vmem:[%s2058_s11 + $0x40] sm:$0xff] %v1165_v41  ;;  %v1168_v45 = vadd.f32 %v1269_v22, %v1167_v44 }
 0x4e2   :  { %1206 = vst [vmem:[%s2058_s11 + $0x58] sm:$0xff] %v1176_v43 }
 0x4e3   :  { %1204 = vst [vmem:[%s2058_s11 + $0x48] sm:$0xff] %v1168_v45 }
 0x4ed   :  { %v1484_v46 = vpop.f32.mrb[52].mxu1 }
 0x4ee   :  { %v1189_v47 = vadd.f32 %v1484_v46, %v1269_v22  ;;  %v1180_v48 = vpop.f32.mrb[53].mxu1 }
 0x4ef   :  { %v1181_v49 = vadd.f32 %v1269_v22, %v1180_v48  ;;  %v1485_v50 = vpop.f32.mrb[54].mxu1 }
 0x4f0   :  { %1209 = vst [vmem:[%s2058_s11 + $0x70] sm:$0xff] %v1189_v47  ;;  %v1192_v51 = vadd.f32 %v1485_v50, %v1269_v22  ;;  %v1183_v52 = vpop.f32.mrb[55].mxu1 }
 0x4f1   :  { %1207 = vst [vmem:[%s2058_s11 + $0x60] sm:$0xff] %v1181_v49  ;;  %v1184_v53 = vadd.f32 %v1269_v22, %v1183_v52 }
 0x4f2   :  { %1210 = vst [vmem:[%s2058_s11 + $0x78] sm:$0xff] %v1192_v51 }
 0x4f3   :  { %1208 = vst [vmem:[%s2058_s11 + $0x68] sm:$0xff] %v1184_v53 }
 0x4f4   :  { %1215 = vsyncpa [#allocation3], 1 }
 0x4f5   :  { %1216 = vsyncpa [#allocation5], 1 }
 0x4f6   :  { %1217 = vsyncpa [#allocation8], 1 }

</bundles_post_ra>
